<compile_context>
chip_gen: v7x
topology: tpu7x:2x2x1
jax: 0.10.0
libtpu: 0.0.40
codegen_flags: <defaults>
</compile_context>

<pallas_src>
import functools

import jax
import jax.numpy as jnp
from jax.experimental import pallas as pl
from jax.experimental.pallas import tpu as pltpu


_TM = 512     # sublane tile (multiple of 8)
_TL = 1024    # lane tile of the INPUT (multiple of 128); output block is 2*_TL


def _tiles(m, l):
    # A block dim equal to the full array dim is always legal, so small inputs
    # (like the smoke-test shapes below) use a single full block.
    # NOTE: for tiny L (< 64) the 2*l output lane width is below 128 and the
    # writeback uses masked vst.msk partial stores -- fine for smoke tests, but
    # real workloads should keep 2*tl a multiple of 128 (which _TL guarantees).
    tm = m if m < _TM else _TM
    tl = l if l < _TL else _TL
    return tm, tl


def _cost(m, l, dtype):
    # Pure-bandwidth op: read 1x + write 2x.
    nbytes = 3 * m * l * jnp.dtype(dtype).itemsize
    return pl.CostEstimate(flops=0, transcendentals=0, bytes_accessed=nbytes)


# ---------------------------------------------------------------------------
# Kernel bodies.  Each consumes an input block x of shape (TM, TL) and writes
# the nearest-upsampled data:  out[:, 2*j + r] = x[:, j],  r in {0, 1}.
# ---------------------------------------------------------------------------

def _dense_kernel(x_ref, o_ref):
    # Single-pass dense formulation: each output vreg is written once,
    # unmasked.  o_ref block is (TM, 2*TL), lane-dense.
    x = x_ref[...]
    tm, tl = x.shape
    o_ref[...] = jnp.broadcast_to(x[:, :, None], (tm, tl, 2)).reshape(tm, 2 * tl)


def _strided_kernel(x_ref, o_ref):
    # Two lane-strided stores: even lanes, then odd lanes.  The lane shuffle is
    # free filler under the DMA-bound regime on v5e/v6e; the HBM store stays a
    # dense full block.
    x = x_ref[...]
    tl = x.shape[-1]
    o_ref[:, pl.ds(0, tl, stride=2)] = x
    o_ref[:, pl.ds(1, tl, stride=2)] = x


def _replica_kernel(x_ref, o_ref):
    # Guaranteed-lowering fallback: o_ref block is (TM, 2, TL); both replica
    # slots get a copy of x; the interleave is finished by an XLA
    # transpose+reshape outside (one extra HBM pass -- fallback only).
    x = x_ref[...]
    tm, tl = x.shape
    o_ref[...] = jnp.broadcast_to(x[:, None, :], (tm, 2, tl))


# ---------------------------------------------------------------------------
# pallas_call builders.
# ---------------------------------------------------------------------------

def _upsample_2d(x2, formulation):
    """2x nearest upsample along the last axis of a 2-D (M, L) array."""
    m, l = x2.shape
    tm, tl = _tiles(m, l)
    grid = (pl.cdiv(m, tm), pl.cdiv(l, tl))
    cparams = pltpu.CompilerParams(
        dimension_semantics=("parallel", "parallel"))
    cost = _cost(m, l, x2.dtype)

    if formulation == "replica":
        rep = pl.pallas_call(
            _replica_kernel,
            out_shape=jax.ShapeDtypeStruct((m, 2, l), x2.dtype),
            grid=grid,
            in_specs=[pl.BlockSpec((tm, tl), lambda i, j: (i, j))],
            out_specs=pl.BlockSpec((tm, 2, tl), lambda i, j: (i, 0, j)),
            compiler_params=cparams,
            cost_estimate=cost,
        )(x2)
        # Layout glue: rep[m, r, j] -> out[m, 2*j + r]
        return jnp.transpose(rep, (0, 2, 1)).reshape(m, 2 * l)

    kernel = _dense_kernel if formulation == "dense" else _strided_kernel
    return pl.pallas_call(
        kernel,
        out_shape=jax.ShapeDtypeStruct((m, 2 * l), x2.dtype),
        grid=grid,
        in_specs=[pl.BlockSpec((tm, tl), lambda i, j: (i, j))],
        # Output DMA is 2x the input traffic; a deeper write buffer hides
        # writeback latency jitter (still only 16 MiB total VMEM).
        out_specs=pl.BlockSpec((tm, 2 * tl), lambda i, j: (i, j),
                               pipeline_mode=pl.Buffered(3)),
        compiler_params=cparams,
        cost_estimate=cost,
    )(x2)


@functools.lru_cache(maxsize=None)
def _select_formulation(tm, tl, dtype_name):
    """One-time compile probe: pick the fastest interleave formulation that the
    current Mosaic backend can lower for this exact block configuration.

    The probe compiles a single-block instance (shape == block shape), so the
    real call never hits a lowering failure and never pays a per-call device
    sync; the broad `except` below is scoped to this probe only.
    """
    probe = jax.ShapeDtypeStruct((tm, tl), jnp.dtype(dtype_name))
    for name in ("dense", "strided"):
        try:
            jax.jit(functools.partial(_upsample_2d, formulation=name)) \
               .lower(probe).compile()
            return name
        except Exception:
            continue
    return "replica"


def upsample_nearest_x2(x):
    """Nearest-neighbour 2x upsample along the last axis of an (N, C, L) array,
    matching nn.Upsample(scale_factor=2) on 3-D input."""
    n, c, l = x.shape
    m = n * c
    x2 = x.reshape(m, l)                     # free contiguous collapse of (N, C)
    tm, tl = _tiles(m, l)
    formulation = _select_formulation(tm, tl, jnp.dtype(x2.dtype).name)
    y2 = _upsample_2d(x2, formulation)
    return y2.reshape(n, c, 2 * l)


if __name__ == "__main__":
    key = jax.random.PRNGKey(0)

    # Small 3-D (N, C, L) input consistent with the module's usage.
    x = jax.random.normal(key, (2, 4, 8), dtype=jnp.float32)
    y = jax.block_until_ready(upsample_nearest_x2(x))
    ref = jnp.repeat(x, 2, axis=-1)
    assert y.shape == (2, 4, 16), y.shape
    assert jnp.array_equal(y, ref), "mismatch vs nearest-upsample reference"

    # Shape from the original module's get_random_inputs(): (1, 1, 5).
    x5 = jax.random.normal(jax.random.PRNGKey(0), (1, 1, 5), dtype=jnp.float32)
    y5 = jax.block_until_ready(upsample_nearest_x2(x5))
    assert y5.shape == (1, 1, 10), y5.shape
    assert jnp.array_equal(y5, jnp.repeat(x5, 2, axis=-1)), "mismatch on (1,1,5)"

    print("KERNEL_OK")
</pallas_src>

<mosaic_0001>
module attributes {stable_mosaic.version = 11 : i64} {
  func.func @_replica_kernel(%arg0: i32, %arg1: i32, %arg2: memref<8x8xf32, #tpu.memory_space<vmem>>, %arg3: memref<8x2x8xf32, #tpu.memory_space<vmem>>) attributes {dimension_semantics = [#tpu.dimension_semantics<parallel>, #tpu.dimension_semantics<parallel>], iteration_bounds = array<i64: 1, 1>, scalar_prefetch = 0 : i64, scratch_operands = 0 : i64, tpu.core_type = #tpu.core_type<tc>, window_params = [{transform_indices = @transform_0, window_bounds = array<i64: 8, 8>}, {transform_indices = @transform_1, window_bounds = array<i64: 8, 2, 8>}]} {
    %c0 = arith.constant 0 : index
    %c0_0 = arith.constant 0 : index
    %0 = vector.load %arg2[%c0, %c0_0] : memref<8x8xf32, #tpu.memory_space<vmem>>, vector<8x8xf32>
    %1 = vector.shape_cast %0 : vector<8x8xf32> to vector<8x1x8xf32>
    %2 = vector.shape_cast %1 : vector<8x1x8xf32> to vector<8x1x8xf32>
    %3 = vector.broadcast %2 : vector<8x1x8xf32> to vector<8x2x8xf32>
    %c0_1 = arith.constant 0 : index
    %c0_2 = arith.constant 0 : index
    %c0_3 = arith.constant 0 : index
    %4 = vector.load %arg3[%c0_1, %c0_2, %c0_3] : memref<8x2x8xf32, #tpu.memory_space<vmem>>, vector<8x2x8xf32>
    tpu.vector_store %arg3[%c0_1, %c0_2, %c0_3], %3 {strides = array<i32>} : memref<8x2x8xf32, #tpu.memory_space<vmem>>, vector<8x2x8xf32>,
    return
  }
  func.func @transform_0(%arg0: i32, %arg1: i32) -> (i32, i32) {
    %c0_i32 = arith.constant 0 : i32
    return %arg0, %arg1 : i32, i32
  }
  func.func @transform_1(%arg0: i32, %arg1: i32) -> (i32, i32, i32) {
    %c0_i32 = arith.constant 0 : i32
    %c0_i32_0 = arith.constant 0 : i32
    return %arg0, %c0_i32, %arg1 : i32, i32, i32
  }
}

</mosaic_0001>

<bundles_post_ra>
// kernel: tpu_custom_call.1
= control target key start
LH: loop header
LB: loop body
LE: loop exit
PB: predicated region body
PF: predicated region fallthrough
CT: control target
= control target key end

     0   :  { %6 = vsyncpa [#allocation3], 0  ;;  %s238_s0 = inlined_call_operand.hbm [shape: f32[8,8], index: 0, kind: input, shape index: {}]   ;;  %s239_s1 = inlined_call_operand.hbm [shape: f32[8,2,8], index: 1, kind: output, shape index: {}]  }
   0x1   :  { %7 = vsyncpa [#allocation4], 0  ;;  %s191_s6 = smov [#allocation2]   ;;  %s143_s10 = scalar_lea.hbm %s238_s0, 128 }
   0x2   :  { %s14_s7 = sshll.u32 %s191_s6, 4  ;;  %p144_p0 = scmp.ne.s32.totalorder %s238_s0, %s143_s10  ;;  %s15_s7 = int_to_ptr.vmem [resolvable:$true] %s14_s7 }
   0x3   :  { %p147_p1 = scmp.lt.u32.totalorder %s143_s10, %s238_s0 }
   0x5   :  { %p149_p2 = pnand %p147_p1, %p144_p0 }
   0x7   :  { %152 = shalt.err (!%p149_p2)
}
   0x8   :  { %s153_s15 = scalar_lea.vmem %s15_s7, 128  ;;  %p158_p4 = scmp.lt.s32.totalorder %s15_s7, %s15_s7 }
   0x9   :  { %p154_p3 = scmp.ne.s32.totalorder %s15_s7, %s153_s15  ;;  %p159_p5 = scmp.lt.s32.totalorder %s153_s15, %s153_s15 }
   0xb   :  { %p160_p6 = por %p159_p5, %p158_p4 }
   0xd   :  { %p161_p7 = pnand %p160_p6, %p154_p3 }
   0xf   :  { %164 = shalt.err (!%p161_p7)
}
  0x10   :  { %17 = dma.hbm_to_vmem [thread:$0]  %s238_s0, 128, %s15_s7, [#allocation3]  }
  0x11   :  { %187 = dma.done.wait [#allocation3], 128  }
  0x12   :  { %188 = vsyncadd [#allocation3], 4294967168  ;;  %v27_v0 = vlaneseq  ;;  %v192_v1 = vmov 1966171168   ;;  %v21_v6 = vld [vmem:[#allocation2] sm:$0xff]  ;;  %vm112_vm0 = vcmask 58368  }
  0x13   :  { %v25_v2 = vunpack.c.l.s4 %v192_v1  ;;  %v23_v9 = vcombine.high %v21_v6, %v21_v6  ;;  %s193_s0 = smov [#allocation5]  }
  0x14   :  { %v28_v3 = vshrl.u32 %v27_v0, 7  ;;  %s126_s18 = sshll.u32 %s193_s0, 4  ;;  %s127_s18 = int_to_ptr.vmem [resolvable:$true] %s126_s18 }
  0x15   :  { %v26_v4 = vunpack.c.0.s8 %v25_v2  ;;  %s165_s19 = scalar_lea.vmem %s127_s18, 256  ;;  %p170_p9 = scmp.lt.s32.totalorder %s127_s18, %s127_s18 }
  0x16   :  { %v74_v8 = vsub.s32 0, %v28_v3  ;;  %p166_p8 = scmp.ne.s32.totalorder %s127_s18, %s165_s19  ;;  %p171_p10 = scmp.lt.s32.totalorder %s165_s19, %s165_s19 }
  0x17   :  { %v29_v5 = vsub.s32 %v26_v4, %v28_v3 }
  0x18   :  { %p172_p11 = por %p171_p10, %p170_p9 }
  0x19   :  { %v30_v7 = vrot.slane %v21_v6, %v29_v5  ;;  %v37_v12 = vrot.slane %v23_v9, %v29_v5 }
  0x1a   :  { %p173_p12 = pnand %p172_p11, %p166_p8 }
  0x1b   :  { %v46_v10 = vrot.slane %v30_v7, %v29_v5  ;;  %v38_v11 = vcombine.high %v30_v7, %v30_v7  ;;  %v53_v16 = vrot.slane %v37_v12, %v29_v5  ;;  %v39_v17 = vcombine.high %v37_v12, %v37_v12 }
  0x1d   :  { %v75_v13 = vrot.slane %v46_v10, %v74_v8  ;;  %v60_v14 = vrot.slane %v38_v11, %v29_v5  ;;  %v68_v15 = vcombine.high %v46_v10, %v46_v10  ;;  %v91_v21 = vrot.slane %v53_v16, %v74_v8 }
  0x1e   :  { %v67_v22 = vrot.slane %v39_v17, %v29_v5  ;;  %v69_v23 = vcombine.high %v53_v16, %v53_v16 }
  0x1f   :  { %113 = vst.msk [vmem:[#allocation5] sm:$0x3] %vm112_vm0, %v75_v13  ;;  %v79_v18 = vrot.slane %v60_v14, %v74_v8  ;;  %v83_v19 = vrot.slane %v68_v15, %v74_v8  ;;  %v70_v20 = vcombine.high %v60_v14, %v60_v14  ;;  %117 = vst.msk [vmem:[#allocation5 + $0x8] sm:$0x3] %vm112_vm0, %v91_v21 }
  0x20   :  { %v95_v25 = vrot.slane %v67_v22, %v74_v8  ;;  %v99_v26 = vrot.slane %v69_v23, %v74_v8  ;;  %v71_v27 = vcombine.high %v67_v22, %v67_v22 }
  0x21   :  { %114 = vst.msk [vmem:[#allocation5 + $0x2] sm:$0x3] %vm112_vm0, %v79_v18  ;;  %115 = vst.msk [vmem:[#allocation5 + $0x4] sm:$0x3] %vm112_vm0, %v83_v19  ;;  %v87_v24 = vrot.slane %v70_v20, %v74_v8 }
  0x22   :  { %118 = vst.msk [vmem:[#allocation5 + $0xa] sm:$0x3] %vm112_vm0, %v95_v25  ;;  %119 = vst.msk [vmem:[#allocation5 + $0xc] sm:$0x3] %vm112_vm0, %v99_v26  ;;  %v103_v28 = vrot.slane %v71_v27, %v74_v8 }
  0x23   :  { %116 = vst.msk [vmem:[#allocation5 + $0x6] sm:$0x3] %vm112_vm0, %v87_v24 }
  0x24   :  { %120 = vst.msk [vmem:[#allocation5 + $0xe] sm:$0x3] %vm112_vm0, %v103_v28 }
  0x25   :  { %176 = shalt.err (!%p173_p12)
}
  0x26   :  { %s177_s22 = scalar_lea.hbm %s239_s1, 256 }
  0x27   :  { %p178_p13 = scmp.ne.s32.totalorder %s239_s1, %s177_s22  ;;  %p181_p0 = scmp.lt.u32.totalorder %s177_s22, %s239_s1 }
  0x29   :  { %p183_p1 = pnand %p181_p0, %p178_p13 }
  0x2b   :  { %186 = shalt.err (!%p183_p1)
}
  0x2c   :  { %s194_s27 = smov 32   ;;  %s195_s28 = smov 2  }
  0x2d   :  { %132 = dma.vmem_to_hbm [thread:$0]  %s127_s18, 256, %s239_s1, [#allocation4], %s194_s27, %s194_s27, %s195_s28  }
  0x2e   :  { %189 = dma.done.wait [#allocation4], 256  }
  0x2f   :  { %190 = vsyncadd [#allocation4], 4294967040 }
  0x30   :  { %136 = vsyncpa [#allocation3], 1 }
  0x31   :  { %137 = vsyncpa [#allocation4], 1 }

</bundles_post_ra>
